<compile_context>
chip_gen: v7x
topology: tpu7x:2x2x1
jax: 0.10.0
libtpu: 0.0.40
codegen_flags: <defaults>
</compile_context>

<pallas_src>
from functools import partial

import jax
import jax.numpy as jnp
from jax import lax
from jax.experimental import pallas as pl
from jax.experimental.pallas import tpu as pltpu

LANE = 128
SUBLANE = 8
MAX_TILE_ROWS = 1024   # 1024 x 128 f32 = 512 KiB per input stream block


def _round_up(x, m):
    return (x + m - 1) // m * m


def _dloss_kernel(rl_ref, fl_ref, ur_ref, uf_ref, out_ref, acc_ref,
                  *, n_valid, tile_rows, needs_mask):
    i = pl.program_id(0)   # core-split axis ("parallel")
    j = pl.program_id(1)   # reduction axis within a split ("arbitrary")

    @pl.when(j == 0)
    def _():
        acc_ref[...] = jnp.zeros_like(acc_ref)

    rl = rl_ref[...].astype(jnp.float32)
    fl = fl_ref[...].astype(jnp.float32)
    tgt_real = 0.7 + ur_ref[...].astype(jnp.float32) * 0.5   # soft ones
    tgt_fake = uf_ref[...].astype(jnp.float32)               # soft zeros

    def bce(x, z):
        # Stable binary_cross_entropy_with_logits, per element.
        # exp(-|x|) <= 1 so log(1 + y) is within one f32 ulp of log1p(y) here.
        return jnp.maximum(x, 0.0) - x * z + jnp.log(1.0 + jnp.exp(-jnp.abs(x)))

    # Both losses fused per tile: one pass over the data, exp/log pushes
    # back-to-back so the single EUP slot stays saturated if it ever binds.
    loss = bce(rl, tgt_real) + bce(fl, tgt_fake)

    if needs_mask:   # static Python bool: only traced when the input was padded
        tile_idx = i * pl.num_programs(1) + j
        base = tile_idx * (tile_rows * LANE)
        row = lax.broadcasted_iota(jnp.int32, (tile_rows, LANE), 0)
        col = lax.broadcasted_iota(jnp.int32, (tile_rows, LANE), 1)
        gidx = base + row * LANE + col
        loss = jnp.where(gidx < n_valid, loss, 0.0)

    # Fold the tile down to one (8, 128) vreg worth of partial sums:
    # pure VPU adds, no cross-lane/XLU or scalar work inside the hot loop.
    folded = loss.reshape(tile_rows // SUBLANE, SUBLANE, LANE).sum(axis=0)
    acc_ref[...] += folded

    @pl.when(j == pl.num_programs(1) - 1)
    def _():
        out_ref[...] = acc_ref[...]


def dloss(real_logit, fake_logit, u_real, u_fake):
    """Pallas implementation of DLoss.forward.

    u_real / u_fake play the role of torch.rand_like (uniform [0,1) randoms);
    they are generated in plain JAX glue for determinism.
    """
    assert real_logit.shape == fake_logit.shape == u_real.shape == u_fake.shape
    n = real_logit.size

    n_rows = _round_up(pl.cdiv(n, LANE), SUBLANE)
    tile_rows = min(MAX_TILE_ROWS, n_rows)
    n_tiles = pl.cdiv(n_rows, tile_rows)
    num_splits = 2 if n_tiles >= 2 else 1        # v7x: one split per TensorCore
    tiles_per_split = pl.cdiv(n_tiles, num_splits)
    total_rows = num_splits * tiles_per_split * tile_rows
    padded_n = total_rows * LANE
    needs_mask = padded_n != n

    def to_slab(x):
        # Keep the caller's dtype (bf16 logits stream at half the bytes);
        # the cast to f32 happens inside the kernel, after the DMA.
        flat = jnp.ravel(x)
        if needs_mask:   # pad only when the flat size does not tile exactly
            flat = jnp.pad(flat, (0, padded_n - n))
        return flat.reshape(total_rows, LANE)

    slabs = [to_slab(a) for a in (real_logit, fake_logit, u_real, u_fake)]
    # TODO(synk): optional in-kernel RNG (pltpu.prng_seed / prng_random_bits)
    # would drop the two uniform HBM streams (~40% bytes); kept as streamed
    # inputs for bit-level determinism of the torch.rand_like analog.

    tile_spec = pl.BlockSpec((tile_rows, LANE),
                             lambda i, j: (i * tiles_per_split + j, 0))

    partials = pl.pallas_call(
        partial(_dloss_kernel, n_valid=n, tile_rows=tile_rows,
                needs_mask=needs_mask),
        out_shape=jax.ShapeDtypeStruct((num_splits * SUBLANE, LANE),
                                       jnp.float32),
        grid_spec=pltpu.PrefetchScalarGridSpec(
            num_scalar_prefetch=0,
            grid=(num_splits, tiles_per_split),
            in_specs=[tile_spec] * 4,
            out_specs=pl.BlockSpec((SUBLANE, LANE), lambda i, j: (i, 0)),
            scratch_shapes=[pltpu.VMEM((SUBLANE, LANE), jnp.float32)]),
        compiler_params=pltpu.CompilerParams(
            dimension_semantics=("parallel", "arbitrary")),
    )(*slabs)

    # Final cross-lane reduction + normalization in JAX glue:
    # (sum_real + sum_fake) / (2 n)  ==  (mean_real + mean_fake) / 2
    return jnp.sum(partials) / (2.0 * n)


def dloss_ref(real_logit, fake_logit, u_real, u_fake):
    def bce(x, z):
        l = jnp.maximum(x, 0.0) - x * z + jnp.log1p(jnp.exp(-jnp.abs(x)))
        return jnp.mean(l)

    real_loss = bce(real_logit.astype(jnp.float32),
                    0.7 + u_real.astype(jnp.float32) * 0.5)
    fake_loss = bce(fake_logit.astype(jnp.float32),
                    u_fake.astype(jnp.float32))
    return (real_loss + fake_loss) / 2.0


if __name__ == "__main__":
    key = jax.random.PRNGKey(0)

    # shape -> exercises
    #   (2, 4, 16, 16)    exact (rows,128) fit, single tile            (base)
    #   (3, 1, 7, 5)      ragged tail -> in-kernel validity mask
    #   (2, 12, 128, 128) multi-tile reduction + 2-way core split + padding
    shapes = [(2, 4, 16, 16), (3, 1, 7, 5), (2, 12, 128, 128)]
    for shape in shapes:
        key, k1, k2, k3, k4 = jax.random.split(key, 5)
        real_logit = jax.random.normal(k1, shape, jnp.float32) * 2.0
        fake_logit = jax.random.normal(k2, shape, jnp.float32) * 2.0
        u_real = jax.random.uniform(k3, shape, jnp.float32)   # torch.rand_like
        u_fake = jax.random.uniform(k4, shape, jnp.float32)

        got = jax.block_until_ready(
            dloss(real_logit, fake_logit, u_real, u_fake))
        want = jax.block_until_ready(
            dloss_ref(real_logit, fake_logit, u_real, u_fake))
        assert jnp.allclose(got, want, rtol=2e-5, atol=2e-5), (shape, got, want)

    print("KERNEL_OK")
</pallas_src>

<mosaic_0001>
module attributes {stable_mosaic.version = 11 : i64} {
  func.func @_dloss_kernel(%arg0: i32, %arg1: i32, %arg2: memref<16x128xf32, #tpu.memory_space<vmem>>, %arg3: memref<16x128xf32, #tpu.memory_space<vmem>>, %arg4: memref<16x128xf32, #tpu.memory_space<vmem>>, %arg5: memref<16x128xf32, #tpu.memory_space<vmem>>, %arg6: memref<8x128xf32, #tpu.memory_space<vmem>>, %arg7: memref<8x128xf32, #tpu.memory_space<vmem>>) attributes {dimension_semantics = [#tpu.dimension_semantics<parallel>, #tpu.dimension_semantics<arbitrary>], iteration_bounds = array<i64: 1, 1>, scalar_prefetch = 0 : i64, scratch_operands = 1 : i64, tpu.core_type = #tpu.core_type<tc>, window_params = [{transform_indices = @transform_0, window_bounds = array<i64: 16, 128>}, {transform_indices = @transform_1, window_bounds = array<i64: 16, 128>}, {transform_indices = @transform_2, window_bounds = array<i64: 16, 128>}, {transform_indices = @transform_3, window_bounds = array<i64: 16, 128>}, {transform_indices = @transform_4, window_bounds = array<i64: 8, 128>}]} {
    %c0_i32 = arith.constant 0 : i32
    %0 = arith.cmpi eq, %arg1, %c0_i32 : i32
    %1 = arith.extui %0 : i1 to i32
    %c0_i32_0 = arith.constant 0 : i32
    %2 = arith.cmpi ne, %1, %c0_i32_0 : i32
    scf.if %2 {
      %cst_22 = arith.constant 0.000000e+00 : f32
      %44 = vector.broadcast %cst_22 : f32 to vector<8x128xf32>
      %c0_23 = arith.constant 0 : index
      %c0_24 = arith.constant 0 : index
      %45 = vector.load %arg7[%c0_23, %c0_24] : memref<8x128xf32, #tpu.memory_space<vmem>>, vector<8x128xf32>
      tpu.vector_store %arg7[%c0_23, %c0_24], %44 {strides = array<i32>} : memref<8x128xf32, #tpu.memory_space<vmem>>, vector<8x128xf32>,
    } else {
    }
    %c0 = arith.constant 0 : index
    %c0_1 = arith.constant 0 : index
    %3 = vector.load %arg2[%c0, %c0_1] : memref<16x128xf32, #tpu.memory_space<vmem>>, vector<16x128xf32>
    %c0_2 = arith.constant 0 : index
    %c0_3 = arith.constant 0 : index
    %4 = vector.load %arg3[%c0_2, %c0_3] : memref<16x128xf32, #tpu.memory_space<vmem>>, vector<16x128xf32>
    %c0_4 = arith.constant 0 : index
    %c0_5 = arith.constant 0 : index
    %5 = vector.load %arg4[%c0_4, %c0_5] : memref<16x128xf32, #tpu.memory_space<vmem>>, vector<16x128xf32>
    %cst = arith.constant 5.000000e-01 : f32
    %6 = vector.broadcast %cst : f32 to vector<16x128xf32>
    %7 = arith.mulf %5, %6 : vector<16x128xf32>
    %cst_6 = arith.constant 0.699999988 : f32
    %8 = vector.broadcast %cst_6 : f32 to vector<16x128xf32>
    %9 = arith.addf %8, %7 : vector<16x128xf32>
    %c0_7 = arith.constant 0 : index
    %c0_8 = arith.constant 0 : index
    %10 = vector.load %arg5[%c0_7, %c0_8] : memref<16x128xf32, #tpu.memory_space<vmem>>, vector<16x128xf32>
    %cst_9 = arith.constant 0.000000e+00 : f32
    %11 = vector.broadcast %cst_9 : f32 to vector<16x128xf32>
    %12 = arith.maximumf %3, %11 : vector<16x128xf32>
    %13 = arith.mulf %3, %9 : vector<16x128xf32>
    %14 = arith.subf %12, %13 : vector<16x128xf32>
    %15 = math.absf %3 : vector<16x128xf32>
    %cst_10 = arith.constant 0.000000e+00 : f32
    %16 = vector.broadcast %cst_10 : f32 to vector<16x128xf32>
    %17 = arith.subf %16, %15 : vector<16x128xf32>
    %18 = math.exp %17 : vector<16x128xf32>
    %cst_11 = arith.constant 1.000000e+00 : f32
    %19 = vector.broadcast %cst_11 : f32 to vector<16x128xf32>
    %20 = arith.addf %19, %18 : vector<16x128xf32>
    %21 = math.log %20 : vector<16x128xf32>
    %22 = arith.addf %14, %21 : vector<16x128xf32>
    %cst_12 = arith.constant 0.000000e+00 : f32
    %23 = vector.broadcast %cst_12 : f32 to vector<16x128xf32>
    %24 = arith.maximumf %4, %23 : vector<16x128xf32>
    %25 = arith.mulf %4, %10 : vector<16x128xf32>
    %26 = arith.subf %24, %25 : vector<16x128xf32>
    %27 = math.absf %4 : vector<16x128xf32>
    %cst_13 = arith.constant 0.000000e+00 : f32
    %28 = vector.broadcast %cst_13 : f32 to vector<16x128xf32>
    %29 = arith.subf %28, %27 : vector<16x128xf32>
    %30 = math.exp %29 : vector<16x128xf32>
    %cst_14 = arith.constant 1.000000e+00 : f32
    %31 = vector.broadcast %cst_14 : f32 to vector<16x128xf32>
    %32 = arith.addf %31, %30 : vector<16x128xf32>
    %33 = math.log %32 : vector<16x128xf32>
    %34 = arith.addf %26, %33 : vector<16x128xf32>
    %35 = arith.addf %22, %34 : vector<16x128xf32>
    %36 = vector.shape_cast %35 : vector<16x128xf32> to vector<2x8x128xf32>
    %cst_15 = arith.constant dense<0.000000e+00> : vector<8x128xf32>
    %37 = vector.multi_reduction <add>, %36, %cst_15 [0] : vector<2x8x128xf32> to vector<8x128xf32>
    %c0_16 = arith.constant 0 : index
    %c0_17 = arith.constant 0 : index
    %38 = vector.load %arg7[%c0_16, %c0_17] : memref<8x128xf32, #tpu.memory_space<vmem>>, vector<8x128xf32>
    %39 = arith.addf %38, %37 : vector<8x128xf32>
    %c0_18 = arith.constant 0 : index
    %c0_19 = arith.constant 0 : index
    %40 = vector.load %arg7[%c0_18, %c0_19] : memref<8x128xf32, #tpu.memory_space<vmem>>, vector<8x128xf32>
    tpu.vector_store %arg7[%c0_18, %c0_19], %39 {strides = array<i32>} : memref<8x128xf32, #tpu.memory_space<vmem>>, vector<8x128xf32>,
    %c0_i32_20 = arith.constant 0 : i32
    %41 = arith.cmpi eq, %arg1, %c0_i32_20 : i32
    %42 = arith.extui %41 : i1 to i32
    %c0_i32_21 = arith.constant 0 : i32
    %43 = arith.cmpi ne, %42, %c0_i32_21 : i32
    scf.if %43 {
      %c0_22 = arith.constant 0 : index
      %c0_23 = arith.constant 0 : index
      %44 = vector.load %arg7[%c0_22, %c0_23] : memref<8x128xf32, #tpu.memory_space<vmem>>, vector<8x128xf32>
      %c0_24 = arith.constant 0 : index
      %c0_25 = arith.constant 0 : index
      %45 = vector.load %arg6[%c0_24, %c0_25] : memref<8x128xf32, #tpu.memory_space<vmem>>, vector<8x128xf32>
      tpu.vector_store %arg6[%c0_24, %c0_25], %44 {strides = array<i32>} : memref<8x128xf32, #tpu.memory_space<vmem>>, vector<8x128xf32>,
    } else {
    }
    return
  }
  func.func @transform_0(%arg0: i32, %arg1: i32) -> (i32, i32) {
    %c1_i32 = arith.constant 1 : i32
    %0 = arith.muli %arg0, %c1_i32 : i32
    %1 = arith.addi %0, %arg1 : i32
    %c0_i32 = arith.constant 0 : i32
    %c0_i32_0 = arith.constant 0 : i32
    return %1, %c0_i32 : i32, i32
  }
  func.func @transform_1(%arg0: i32, %arg1: i32) -> (i32, i32) {
    %c1_i32 = arith.constant 1 : i32
    %0 = arith.muli %arg0, %c1_i32 : i32
    %1 = arith.addi %0, %arg1 : i32
    %c0_i32 = arith.constant 0 : i32
    %c0_i32_0 = arith.constant 0 : i32
    return %1, %c0_i32 : i32, i32
  }
  func.func @transform_2(%arg0: i32, %arg1: i32) -> (i32, i32) {
    %c1_i32 = arith.constant 1 : i32
    %0 = arith.muli %arg0, %c1_i32 : i32
    %1 = arith.addi %0, %arg1 : i32
    %c0_i32 = arith.constant 0 : i32
    %c0_i32_0 = arith.constant 0 : i32
    return %1, %c0_i32 : i32, i32
  }
  func.func @transform_3(%arg0: i32, %arg1: i32) -> (i32, i32) {
    %c1_i32 = arith.constant 1 : i32
    %0 = arith.muli %arg0, %c1_i32 : i32
    %1 = arith.addi %0, %arg1 : i32
    %c0_i32 = arith.constant 0 : i32
    %c0_i32_0 = arith.constant 0 : i32
    return %1, %c0_i32 : i32, i32
  }
  func.func @transform_4(%arg0: i32, %arg1: i32) -> (i32, i32) {
    %c0_i32 = arith.constant 0 : i32
    %c0_i32_0 = arith.constant 0 : i32
    return %arg0, %c0_i32 : i32, i32
  }
}

</mosaic_0001>

<bundles_post_ra>
// kernel: tpu_custom_call.1
= control target key start
LH: loop header
LB: loop body
LE: loop exit
PB: predicated region body
PF: predicated region fallthrough
CT: control target
= control target key end

     0   :  { %9 = vsyncpa [#allocation4], 0  ;;  %s445_s0 = inlined_call_operand.hbm [shape: f32[16,128], index: 0, kind: input, shape index: {}]   ;;  %s446_s1 = inlined_call_operand.hbm [shape: f32[16,128], index: 1, kind: input, shape index: {}]   ;;  %s447_s2 = inlined_call_operand.hbm [shape: f32[16,128], index: 2, kind: input, shape index: {}]   ;;  %s448_s3 = inlined_call_operand.hbm [shape: f32[16,128], index: 3, kind: input, shape index: {}]   ;;  %s449_s4 = inlined_call_operand.hbm [shape: f32[8,128], index: 4, kind: output, shape index: {}]  }
   0x1   :  { %10 = vsyncpa [#allocation7], 0 }
   0x2   :  { %11 = vsyncpa [#allocation10], 0 }
   0x3   :  { %12 = vsyncpa [#allocation5], 0  ;;  %s327_s15 = smov [#allocation6]   ;;  %s328_s17 = smov [#allocation3]  }
   0x4   :  { %s38_s16 = sshll.u32 %s327_s15, 4  ;;  %s22_s18 = sshll.u32 %s328_s17, 4  ;;  %s39_s16 = int_to_ptr.vmem [resolvable:$true] %s38_s16  ;;  %s359_s18 = int_to_ptr.vmem [resolvable:$true] %s22_s18 }
   0x5   :  { %s209_s21 = scalar_lea.hbm %s446_s1, 256 }
   0x6   :  { %p210_p0 = scmp.ne.s32.totalorder %s446_s1, %s209_s21  ;;  %p213_p1 = scmp.lt.u32.totalorder %s209_s21, %s446_s1 }
   0x8   :  { %p215_p2 = pnand %p213_p1, %p210_p0 }
   0xa   :  { %218 = shalt.err (!%p215_p2)
}
   0xb   :  { %s219_s26 = scalar_lea.vmem %s39_s16, 256  ;;  %p224_p4 = scmp.lt.s32.totalorder %s39_s16, %s39_s16 }
   0xc   :  { %p220_p3 = scmp.ne.s32.totalorder %s39_s16, %s219_s26  ;;  %p225_p5 = scmp.lt.s32.totalorder %s219_s26, %s219_s26 }
   0xe   :  { %p226_p6 = por %p225_p5, %p224_p4 }
  0x10   :  { %p227_p7 = pnand %p226_p6, %p220_p3 }
  0x12   :  { %230 = shalt.err (!%p227_p7)
}
  0x13   :  { %s329_s27 = smov 128   ;;  %s330_s28 = smov 8  }
  0x14   :  { %44 = dma.hbm_to_vmem [thread:$0]  %s446_s1, 256, %s39_s16, [#allocation7], %s329_s27, %s329_s27, %s330_s28  }
  0x15   :  { %s231_s7 = scalar_lea.hbm %s445_s0, 256 }
  0x16   :  { %p232_p8 = scmp.ne.s32.totalorder %s445_s0, %s231_s7  ;;  %p235_p9 = scmp.lt.u32.totalorder %s231_s7, %s445_s0 }
  0x18   :  { %p237_p10 = pnand %p235_p9, %p232_p8 }
  0x1a   :  { %240 = shalt.err (!%p237_p10)
}
  0x1b   :  { %s241_s12 = scalar_lea.vmem %s359_s18, 256  ;;  %p246_p12 = scmp.lt.s32.totalorder %s359_s18, %s359_s18 }
  0x1c   :  { %p242_p11 = scmp.ne.s32.totalorder %s359_s18, %s241_s12  ;;  %p247_p13 = scmp.lt.s32.totalorder %s241_s12, %s241_s12 }
  0x1e   :  { %p248_p0 = por %p247_p13, %p246_p12 }
  0x20   :  { %p249_p1 = pnand %p248_p0, %p242_p11 }
  0x22   :  { %252 = shalt.err (!%p249_p1)
}
  0x23   :  { %28 = dma.hbm_to_vmem [thread:$0]  %s445_s0, 256, %s359_s18, [#allocation4], %s329_s27, %s329_s27, %s330_s28  }
  0x24   :  { %s331_s14 = smov [#allocation8]   ;;  %s332_s16 = smov [#allocation9]  }
  0x25   :  { %s54_s15 = sshll.u32 %s331_s14, 4  ;;  %s70_s17 = sshll.u32 %s332_s16, 4  ;;  %s55_s15 = int_to_ptr.vmem [resolvable:$true] %s54_s15  ;;  %s396_s17 = int_to_ptr.vmem [resolvable:$true] %s70_s17 }
  0x26   :  { %s253_s21 = scalar_lea.hbm %s447_s2, 256 }
  0x27   :  { %p254_p2 = scmp.ne.s32.totalorder %s447_s2, %s253_s21  ;;  %p257_p3 = scmp.lt.u32.totalorder %s253_s21, %s447_s2 }
  0x29   :  { %p259_p4 = pnand %p257_p3, %p254_p2 }
  0x2b   :  { %262 = shalt.err (!%p259_p4)
}
  0x2c   :  { %s263_s0 = scalar_lea.vmem %s55_s15, 256  ;;  %p268_p6 = scmp.lt.s32.totalorder %s55_s15, %s55_s15 }
  0x2d   :  { %p264_p5 = scmp.ne.s32.totalorder %s55_s15, %s263_s0  ;;  %p269_p7 = scmp.lt.s32.totalorder %s263_s0, %s263_s0 }
  0x2f   :  { %p270_p8 = por %p269_p7, %p268_p6 }
  0x31   :  { %p271_p9 = pnand %p270_p8, %p264_p5 }
  0x33   :  { %274 = shalt.err (!%p271_p9)
}
  0x34   :  { %60 = dma.hbm_to_vmem [thread:$0]  %s447_s2, 256, %s55_s15, [#allocation7], %s329_s27, %s329_s27, %s330_s28  }
  0x35   :  { %s275_s5 = scalar_lea.hbm %s448_s3, 256 }
  0x36   :  { %p276_p10 = scmp.ne.s32.totalorder %s448_s3, %s275_s5  ;;  %p279_p11 = scmp.lt.u32.totalorder %s275_s5, %s448_s3 }
  0x38   :  { %p281_p12 = pnand %p279_p11, %p276_p10 }
  0x3a   :  { %284 = shalt.err (!%p281_p12)
}
  0x3b   :  { %s285_s10 = scalar_lea.vmem %s396_s17, 256  ;;  %p290_p0 = scmp.lt.s32.totalorder %s396_s17, %s396_s17 }
  0x3c   :  { %p286_p13 = scmp.ne.s32.totalorder %s396_s17, %s285_s10  ;;  %p291_p1 = scmp.lt.s32.totalorder %s285_s10, %s285_s10 }
  0x3e   :  { %p292_p2 = por %p291_p1, %p290_p0 }
  0x40   :  { %p293_p3 = pnand %p292_p2, %p286_p13 }
  0x42   :  { %296 = shalt.err (!%p293_p3)
}
  0x43   :  { %76 = dma.hbm_to_vmem [thread:$0]  %s448_s3, 256, %s396_s17, [#allocation10], %s329_s27, %s329_s27, %s330_s28  }
  0x44   :  { %319 = dma.done.wait [#allocation4], 256  }
  0x45   :  { %320 = vsyncadd [#allocation4], 4294967040 }
  0x46   :  { %321 = dma.done.wait [#allocation7], 512  }
  0x47   :  { %322 = vsyncadd [#allocation7], 4294966784 }
  0x48   :  { %323 = dma.done.wait [#allocation10], 256  }
  0x49   :  { %324 = vsyncadd [#allocation10], 4294967040  ;;  %v102_v0 = vld [vmem:[#allocation3] sm:$0xff]  ;;  %v103_v1 = vld [vmem:[#allocation3 + $0x8] sm:$0xff]  ;;  %s333_s3 = smov [#allocation11]  }
  0x4a   :  { %v104_v2 = vld [vmem:[#allocation6] sm:$0xff]  ;;  %v120_v3 = vand.u32 2147483647, %v102_v0  ;;  %v105_v4 = vld [vmem:[#allocation6 + $0x8] sm:$0xff]  ;;  %v121_v5 = vand.u32 2147483647, %v103_v1 }
  0x4b   :  { %v142_v8 = vand.u32 2147483647, %v104_v2  ;;  %v143_v10 = vand.u32 2147483647, %v105_v4  ;;  %v106_v16 = vld [vmem:[#allocation8] sm:$0xff]  ;;  %v107_v17 = vld [vmem:[#allocation8 + $0x8] sm:$0xff] }
  0x4c   :  { %v122_v6 = vsub.f32 0.0, %v120_v3  ;;  %v123_v7 = vsub.f32 0.0, %v121_v5  ;;  %v108_v20 = vmul.f32 0.5, %v106_v16  ;;  %v109_v22 = vmul.f32 0.5, %v107_v17  ;;  %v112_v30 = vld [vmem:[#allocation9] sm:$0xff]  ;;  %v113_v31 = vld [vmem:[#allocation9 + $0x8] sm:$0xff] }
  0x4d   :  { %v144_v12 = vsub.f32 0.0, %v142_v8  ;;  %v145_v13 = vsub.f32 0.0, %v143_v10  ;;  %v114_v32 = vmax.f32 %v102_v0, 0.0  ;;  %v115_v34 = vmax.f32 %v103_v1, 0.0  ;;  %s175_s27 = sshll.u32 %s333_s3, 4  ;;  %s176_s27 = int_to_ptr.vmem [resolvable:$true] %s175_s27 }
  0x4e   :  { %v124_v9 = vmul.f32 1.442695, %v122_v6  ;;  %v126_v11 = vmul.f32 1.442695, %v123_v7  ;;  %v110_v27 = vadd.f32 0.7, %v108_v20  ;;  %v138_v37 = vmul.f32 %v112_v30, %v104_v2  ;;  %p302_p5 = scmp.lt.s32.totalorder %s176_s27, %s176_s27 }
  0x4f   :  { %v146_v14 = vmul.f32 1.442695, %v144_v12  ;;  %v148_v15 = vmul.f32 1.442695, %v145_v13  ;;  %v111_v29 = vadd.f32 0.7, %v109_v22  ;;  %v139_v39 = vmul.f32 %v113_v31, %v105_v4 }
  0x50   :  { %193 = vpow2.f32 %v124_v9  ;;  %v116_v33 = vmul.f32 %v110_v27, %v102_v0  ;;  %v136_v36 = vmax.f32 %v104_v2, 0.0  ;;  %v137_v38 = vmax.f32 %v105_v4, 0.0  ;;  %s297_s28 = scalar_lea.vmem %s176_s27, 128 }
  0x51   :  { %195 = vpow2.f32 %v126_v11  ;;  %v117_v35 = vmul.f32 %v111_v29, %v103_v1  ;;  %p298_p4 = scmp.ne.s32.totalorder %s176_s27, %s297_s28  ;;  %p303_p6 = scmp.lt.s32.totalorder %s297_s28, %s297_s28 }
  0x52   :  { %197 = vpow2.f32 %v146_v14  ;;  %v118_v41 = vsub.f32 %v114_v32, %v116_v33  ;;  %v140_v46 = vsub.f32 %v136_v36, %v138_v37  ;;  %v141_v48 = vsub.f32 %v137_v38, %v139_v39 }
  0x53   :  { %199 = vpow2.f32 %v148_v15  ;;  %v119_v43 = vsub.f32 %v115_v34, %v117_v35  ;;  %p304_p7 = por %p303_p6, %p302_p5 }
  0x55   :  { %p305_p8 = pnand %p304_p7, %p298_p4 }
  0x5a   :  { %v194_v18 = vpop.eup %193 }
  0x5b   :  { %v196_v19 = vpop.eup %195  ;;  %v128_v21 = vadd.f32 1.0, %v194_v18 }
  0x5c   :  { %v129_v23 = vadd.f32 1.0, %v196_v19  ;;  %v198_v24 = vpop.eup %197 }
  0x5d   :  { %201 = vlog2.f32 %v128_v21  ;;  %v200_v25 = vpop.eup %199  ;;  %v150_v26 = vadd.f32 1.0, %v198_v24 }
  0x5e   :  { %203 = vlog2.f32 %v129_v23  ;;  %v151_v28 = vadd.f32 1.0, %v200_v25 }
  0x5f   :  { %205 = vlog2.f32 %v150_v26 }
  0x60   :  { %207 = vlog2.f32 %v151_v28 }
  0x67   :  { %v202_v40 = vpop.eup %201 }
  0x68   :  { %v204_v42 = vpop.eup %203  ;;  %v131_v44 = vmul.f32 0.6931472, %v202_v40 }
  0x69   :  { %v133_v45 = vmul.f32 0.6931472, %v204_v42  ;;  %v206_v47 = vpop.eup %205 }
  0x6a   :  { %v208_v49 = vpop.eup %207  ;;  %v134_v50 = vadd.f32 %v131_v44, %v118_v41  ;;  %v153_v51 = vmul.f32 0.6931472, %v206_v47 }
  0x6b   :  { %v135_v52 = vadd.f32 %v133_v45, %v119_v43  ;;  %v155_v53 = vmul.f32 0.6931472, %v208_v49 }
  0x6c   :  { %v156_v54 = vadd.f32 %v153_v51, %v140_v46 }
  0x6d   :  { %v157_v55 = vadd.f32 %v155_v53, %v141_v48 }
  0x6e   :  { %v158_v56 = vadd.f32 %v156_v54, %v134_v50 }
  0x6f   :  { %v159_v57 = vadd.f32 %v157_v55, %v135_v52 }
  0x71   :  { %v160_v58 = vadd.f32 %v159_v57, %v158_v56 }
  0x73   :  { %168 = vst [vmem:[#allocation11] sm:$0xff] %v160_v58 }
  0x74   :  { %308 = shalt.err (!%p305_p8)
}
  0x75   :  { %s309_s13 = scalar_lea.hbm %s449_s4, 128 }
  0x76   :  { %p310_p9 = scmp.ne.s32.totalorder %s449_s4, %s309_s13  ;;  %p313_p10 = scmp.lt.u32.totalorder %s309_s13, %s449_s4 }
  0x78   :  { %p315_p11 = pnand %p313_p10, %p310_p9 }
  0x7a   :  { %318 = shalt.err (!%p315_p11)
}
  0x7b   :  { %178 = dma.vmem_to_hbm [thread:$0]  %s176_s27, 128, %s449_s4, [#allocation5]  }
  0x7c   :  { %325 = dma.done.wait [#allocation5], 128  }
  0x7d   :  { %326 = vsyncadd [#allocation5], 4294967168 }
  0x7e   :  { %182 = vsyncpa [#allocation4], 1 }
  0x7f   :  { %183 = vsyncpa [#allocation7], 1 }
  0x80   :  { %184 = vsyncpa [#allocation10], 1 }
  0x81   :  { %185 = vsyncpa [#allocation5], 1 }

</bundles_post_ra>
